<compile_context>
chip_gen: v5e
topology: v5e:2x2
jax: 0.10.0
libtpu: 0.0.40
codegen_flags: <defaults>
</compile_context>

<pallas_src>
import jax
import jax.numpy as jnp
from jax import lax
from jax.experimental import pallas as pl
from jax.experimental.pallas import tpu as pltpu

LAMBDA_COORD = 5.0
LAMBDA_NOOBJ = 0.5
CLASS_NUM = 20

LANES = 128            # vreg lane width
SUBLANES = 8           # f32 vreg sublane depth
STRIP_ROWS = 8         # rows per in-kernel strip: one (8,128) vreg per channel
MAX_TILE_ROWS = 512    # 512x128 cells/tile: ~15.7 MB/input buffer, v7x-safe
VMEM_LIMIT_BYTES = 48 * 1024 * 1024


def _yolo_loss_kernel(pt_ref, out_ref):
    """pt_ref: (2, C, tile_rows, 128) f32; [0]=pred, [1]=target (channel-major).

    out_ref: (1, 8, 128) f32 per-tile partial sums (reduced in the wrapper).
    """
    n_ch = pt_ref.shape[1]
    tile_rows = pt_ref.shape[2]

    def strip_body(j, acc):
        r = pl.multiple_of(j * STRIP_ROWS, STRIP_ROWS)

        def p(c):   # (8, 128) slab of prediction channel c
            return pt_ref[0, c, pl.ds(r, STRIP_ROWS), :]

        def t(c):   # (8, 128) slab of target channel c
            return pt_ref[1, c, pl.ds(r, STRIP_ROWS), :]

        def sq(x):
            return x * x

        t0, t1, t2, t3, t4 = t(0), t(1), t(2), t(3), t(4)
        p0, p1, p2, p3 = p(0), p(1), p(2), p(3)
        p5, p6, p7, p8 = p(5), p(6), p(7), p(8)

        # Box selection: second compute_iou in the class ([x1,y1,x2,y2]
        # corners), with the real division so zero-union cells behave exactly
        # like the reference (0/0 -> NaN, NaN >= x is False -> box 2).
        area_t = (t2 - t0) * (t3 - t1)

        def iou(x1, y1, x2, y2):
            w = jnp.maximum(jnp.minimum(x2, t2) - jnp.maximum(x1, t0), 0.0)
            h = jnp.maximum(jnp.minimum(y2, t3) - jnp.maximum(y1, t1), 0.0)
            inter = w * h
            area_p = (x2 - x1) * (y2 - y1)
            return inter / (area_p + area_t - inter)

        choose1 = iou(p0, p1, p2, p3) >= iou(p5, p6, p7, p8)

        t5, t6, t7, t8 = t(5), t(6), t(7), t(8)

        # loss1: centre coordinates of the chosen box.
        l1 = jnp.where(choose1,
                       sq(p0 - t0) + sq(p1 - t1),
                       sq(p5 - t5) + sq(p6 - t6))
        # loss2: sqrt of w/h of the chosen box (literal reference form; the
        # EUP sqrts are free under the HBM roofline).
        l2 = jnp.where(choose1,
                       sq(jnp.sqrt(p2) - jnp.sqrt(t2))
                       + sq(jnp.sqrt(p3) - jnp.sqrt(t3)),
                       sq(jnp.sqrt(p7) - jnp.sqrt(t7))
                       + sq(jnp.sqrt(p8) - jnp.sqrt(t8)))
        # loss3 / loss4 share the chosen-box confidence error.
        conf = jnp.where(choose1, sq(p(4) - t4), sq(p(9) - t(9)))

        # loss5: class probabilities, accumulated channel-by-channel (VPU).
        cls = sq(p(10) - t(10))
        for c in range(11, n_ch):
            cls = cls + sq(p(c) - t(c))

        obj_term = LAMBDA_COORD * (l1 + l2) + conf + cls
        noobj_term = jnp.where(t4 == 0.0, LAMBDA_NOOBJ * conf, 0.0)
        per_cell = jnp.where(t4 > 0.0, obj_term, noobj_term)
        return acc + per_cell

    acc = lax.fori_loop(0, tile_rows // STRIP_ROWS, strip_body,
                        jnp.zeros((STRIP_ROWS, LANES), jnp.float32))
    out_ref[0, :, :] = acc


def _round_up(x, m):
    return ((x + m - 1) // m) * m


def _relayout(pred, target, n_cells, rows):
    """(batch,S,S,C) x2 -> ONE channel-major (2, C, rows, 128) f32 slab.

    Padded cells are all-zero in both pred and target, so they contribute
    exactly 0 loss (t4 == 0 -> noobj path; conf = (0-0)^2 = 0).
    """
    c = pred.shape[-1]
    st = jnp.stack([pred.reshape(n_cells, c).astype(jnp.float32),
                    target.reshape(n_cells, c).astype(jnp.float32)])
    st = jnp.pad(st, ((0, 0), (0, rows * LANES - n_cells), (0, 0)))
    return jnp.transpose(st, (0, 2, 1)).reshape(2, c, rows, LANES)


@jax.jit
def yolo_loss(pred, target):
    """pred, target: (batch, S, S, B*5 + classNum) float32 -> scalar loss."""
    batch, s, _, c = pred.shape
    n_cells = batch * s * s

    rows8 = _round_up(pl.cdiv(n_cells, LANES), SUBLANES)
    num_tiles = pl.cdiv(rows8, MAX_TILE_ROWS)
    tile_rows = _round_up(pl.cdiv(rows8, num_tiles), SUBLANES)
    rows = tile_rows * num_tiles

    pt = _relayout(pred, target, n_cells, rows)

    partials = pl.pallas_call(
        _yolo_loss_kernel,
        out_shape=jax.ShapeDtypeStruct((num_tiles, SUBLANES, LANES),
                                       jnp.float32),
        grid_spec=pltpu.PrefetchScalarGridSpec(
            num_scalar_prefetch=0,
            grid=(num_tiles,),
            in_specs=[pl.BlockSpec((2, c, tile_rows, LANES),
                                   lambda i: (0, 0, i, 0))],
            out_specs=pl.BlockSpec((1, SUBLANES, LANES), lambda i: (i, 0, 0)),
        ),
        compiler_params=pltpu.CompilerParams(
            dimension_semantics=("parallel",),
            vmem_limit_bytes=VMEM_LIMIT_BYTES),
    )(pt)
    return jnp.sum(partials)


def yolo_loss_ref(pred, target):
    """Pure-JAX reference mirroring the PyTorch forward (vectorized)."""
    p, t = pred.astype(jnp.float32), target.astype(jnp.float32)
    obj = (t[..., 4] > 0).astype(jnp.float32)
    noobj = (t[..., 4] == 0).astype(jnp.float32)

    def iou(b):
        ltx = jnp.maximum(b[..., 0], t[..., 0])
        lty = jnp.maximum(b[..., 1], t[..., 1])
        rbx = jnp.minimum(b[..., 2], t[..., 2])
        rby = jnp.minimum(b[..., 3], t[..., 3])
        w = jnp.maximum(rbx - ltx, 0.0)
        h = jnp.maximum(rby - lty, 0.0)
        inter = w * h
        a1 = (b[..., 2] - b[..., 0]) * (b[..., 3] - b[..., 1])
        a2 = (t[..., 2] - t[..., 0]) * (t[..., 3] - t[..., 1])
        return inter / (a1 + a2 - inter)

    iou1 = iou(p[..., 0:4])
    iou2 = iou(p[..., 5:9])
    b1 = (iou1 >= iou2).astype(jnp.float32)
    b2 = 1.0 - b1

    sq = jnp.square
    l1 = ((sq(p[..., 0] - t[..., 0]) + sq(p[..., 1] - t[..., 1])) * obj * b1
          + (sq(p[..., 5] - t[..., 5]) + sq(p[..., 6] - t[..., 6])) * obj * b2)
    l2 = ((sq(jnp.sqrt(p[..., 2]) - jnp.sqrt(t[..., 2]))
           + sq(jnp.sqrt(p[..., 3]) - jnp.sqrt(t[..., 3]))) * obj * b1
          + (sq(jnp.sqrt(p[..., 7]) - jnp.sqrt(t[..., 7]))
             + sq(jnp.sqrt(p[..., 8]) - jnp.sqrt(t[..., 8]))) * obj * b2)
    c1 = sq(p[..., 4] - t[..., 4])
    c2 = sq(p[..., 9] - t[..., 9])
    l3 = c1 * obj * b1 + c2 * obj * b2
    l4 = c1 * noobj * b1 + c2 * noobj * b2
    l5 = jnp.sum(sq(p[..., 10:] - t[..., 10:]), axis=-1) * obj
    return (LAMBDA_COORD * jnp.sum(l1) + LAMBDA_COORD * jnp.sum(l2)
            + jnp.sum(l3) + LAMBDA_NOOBJ * jnp.sum(l4) + jnp.sum(l5))


if __name__ == "__main__":
    key = jax.random.PRNGKey(0)
    k1, k2, k3 = jax.random.split(key, 3)

    batch, S, B = 2, 8, 2
    C = B * 5 + CLASS_NUM  # 30

    # Positive values so sqrt() is well-defined (as the original loss assumes).
    pred = jax.random.uniform(k1, (batch, S, S, C), jnp.float32, 0.05, 1.0)
    target = jax.random.uniform(k2, (batch, S, S, C), jnp.float32, 0.05, 1.0)
    # Make roughly half of the cells "no object" (confidence exactly 0).
    objmask = jax.random.bernoulli(k3, 0.5, (batch, S, S))
    target = target.at[..., 4].set(jnp.where(objmask, target[..., 4], 0.0))

    loss = jax.block_until_ready(yolo_loss(pred, target))
    ref = yolo_loss_ref(pred, target)

    assert jnp.isfinite(loss), loss
    assert jnp.allclose(loss, ref, rtol=1e-4, atol=1e-3), (loss, ref)
    print("KERNEL_OK")
</pallas_src>

<mosaic_0001>
module attributes {stable_mosaic.version = 11 : i64} {
  func.func @_yolo_loss_kernel(%arg0: i32, %arg1: memref<2x30x8x128xf32, #tpu.memory_space<vmem>>, %arg2: memref<1x8x128xf32, #tpu.memory_space<vmem>>) attributes {dimension_semantics = [#tpu.dimension_semantics<parallel>], iteration_bounds = array<i64: 1>, scalar_prefetch = 0 : i64, scratch_operands = 0 : i64, tpu.core_type = #tpu.core_type<tc>, window_params = [{transform_indices = @transform_0, window_bounds = array<i64: 2, 30, 8, 128>}, {transform_indices = @transform_1, window_bounds = array<i64: 1, 8, 128>}]} {
    %cst = arith.constant 0.000000e+00 : f32
    %0 = vector.broadcast %cst : f32 to vector<8x128xf32>
    %c0_i32 = arith.constant 0 : i32
    %c8_i32 = arith.constant 8 : i32
    %1 = arith.muli %c0_i32, %c8_i32 : i32
    %2 = tpu.assume_multiple %1, 8 : i32
    %c1 = arith.constant 1 : index
    %c0 = arith.constant 0 : index
    %3 = arith.index_cast %2 : i32 to index
    %c0_0 = arith.constant 0 : index
    %4 = vector.load %arg1[%c1, %c0, %3, %c0_0] : memref<2x30x8x128xf32, #tpu.memory_space<vmem>>, vector<1x1x8x128xf32>
    %5 = vector.shape_cast %4 : vector<1x1x8x128xf32> to vector<8x128xf32>
    %c1_1 = arith.constant 1 : index
    %c1_2 = arith.constant 1 : index
    %6 = arith.index_cast %2 : i32 to index
    %c0_3 = arith.constant 0 : index
    %7 = vector.load %arg1[%c1_1, %c1_2, %6, %c0_3] : memref<2x30x8x128xf32, #tpu.memory_space<vmem>>, vector<1x1x8x128xf32>
    %8 = vector.shape_cast %7 : vector<1x1x8x128xf32> to vector<8x128xf32>
    %c1_4 = arith.constant 1 : index
    %c2 = arith.constant 2 : index
    %9 = arith.index_cast %2 : i32 to index
    %c0_5 = arith.constant 0 : index
    %10 = vector.load %arg1[%c1_4, %c2, %9, %c0_5] : memref<2x30x8x128xf32, #tpu.memory_space<vmem>>, vector<1x1x8x128xf32>
    %11 = vector.shape_cast %10 : vector<1x1x8x128xf32> to vector<8x128xf32>
    %c1_6 = arith.constant 1 : index
    %c3 = arith.constant 3 : index
    %12 = arith.index_cast %2 : i32 to index
    %c0_7 = arith.constant 0 : index
    %13 = vector.load %arg1[%c1_6, %c3, %12, %c0_7] : memref<2x30x8x128xf32, #tpu.memory_space<vmem>>, vector<1x1x8x128xf32>
    %14 = vector.shape_cast %13 : vector<1x1x8x128xf32> to vector<8x128xf32>
    %c1_8 = arith.constant 1 : index
    %c4 = arith.constant 4 : index
    %15 = arith.index_cast %2 : i32 to index
    %c0_9 = arith.constant 0 : index
    %16 = vector.load %arg1[%c1_8, %c4, %15, %c0_9] : memref<2x30x8x128xf32, #tpu.memory_space<vmem>>, vector<1x1x8x128xf32>
    %17 = vector.shape_cast %16 : vector<1x1x8x128xf32> to vector<8x128xf32>
    %c0_10 = arith.constant 0 : index
    %c0_11 = arith.constant 0 : index
    %18 = arith.index_cast %2 : i32 to index
    %c0_12 = arith.constant 0 : index
    %19 = vector.load %arg1[%c0_10, %c0_11, %18, %c0_12] : memref<2x30x8x128xf32, #tpu.memory_space<vmem>>, vector<1x1x8x128xf32>
    %20 = vector.shape_cast %19 : vector<1x1x8x128xf32> to vector<8x128xf32>
    %c0_13 = arith.constant 0 : index
    %c1_14 = arith.constant 1 : index
    %21 = arith.index_cast %2 : i32 to index
    %c0_15 = arith.constant 0 : index
    %22 = vector.load %arg1[%c0_13, %c1_14, %21, %c0_15] : memref<2x30x8x128xf32, #tpu.memory_space<vmem>>, vector<1x1x8x128xf32>
    %23 = vector.shape_cast %22 : vector<1x1x8x128xf32> to vector<8x128xf32>
    %c0_16 = arith.constant 0 : index
    %c2_17 = arith.constant 2 : index
    %24 = arith.index_cast %2 : i32 to index
    %c0_18 = arith.constant 0 : index
    %25 = vector.load %arg1[%c0_16, %c2_17, %24, %c0_18] : memref<2x30x8x128xf32, #tpu.memory_space<vmem>>, vector<1x1x8x128xf32>
    %26 = vector.shape_cast %25 : vector<1x1x8x128xf32> to vector<8x128xf32>
    %c0_19 = arith.constant 0 : index
    %c3_20 = arith.constant 3 : index
    %27 = arith.index_cast %2 : i32 to index
    %c0_21 = arith.constant 0 : index
    %28 = vector.load %arg1[%c0_19, %c3_20, %27, %c0_21] : memref<2x30x8x128xf32, #tpu.memory_space<vmem>>, vector<1x1x8x128xf32>
    %29 = vector.shape_cast %28 : vector<1x1x8x128xf32> to vector<8x128xf32>
    %c0_22 = arith.constant 0 : index
    %c5 = arith.constant 5 : index
    %30 = arith.index_cast %2 : i32 to index
    %c0_23 = arith.constant 0 : index
    %31 = vector.load %arg1[%c0_22, %c5, %30, %c0_23] : memref<2x30x8x128xf32, #tpu.memory_space<vmem>>, vector<1x1x8x128xf32>
    %32 = vector.shape_cast %31 : vector<1x1x8x128xf32> to vector<8x128xf32>
    %c0_24 = arith.constant 0 : index
    %c6 = arith.constant 6 : index
    %33 = arith.index_cast %2 : i32 to index
    %c0_25 = arith.constant 0 : index
    %34 = vector.load %arg1[%c0_24, %c6, %33, %c0_25] : memref<2x30x8x128xf32, #tpu.memory_space<vmem>>, vector<1x1x8x128xf32>
    %35 = vector.shape_cast %34 : vector<1x1x8x128xf32> to vector<8x128xf32>
    %c0_26 = arith.constant 0 : index
    %c7 = arith.constant 7 : index
    %36 = arith.index_cast %2 : i32 to index
    %c0_27 = arith.constant 0 : index
    %37 = vector.load %arg1[%c0_26, %c7, %36, %c0_27] : memref<2x30x8x128xf32, #tpu.memory_space<vmem>>, vector<1x1x8x128xf32>
    %38 = vector.shape_cast %37 : vector<1x1x8x128xf32> to vector<8x128xf32>
    %c0_28 = arith.constant 0 : index
    %c8 = arith.constant 8 : index
    %39 = arith.index_cast %2 : i32 to index
    %c0_29 = arith.constant 0 : index
    %40 = vector.load %arg1[%c0_28, %c8, %39, %c0_29] : memref<2x30x8x128xf32, #tpu.memory_space<vmem>>, vector<1x1x8x128xf32>
    %41 = vector.shape_cast %40 : vector<1x1x8x128xf32> to vector<8x128xf32>
    %42 = arith.subf %11, %5 : vector<8x128xf32>
    %43 = arith.subf %14, %8 : vector<8x128xf32>
    %44 = arith.mulf %42, %43 : vector<8x128xf32>
    %45 = arith.minimumf %26, %11 : vector<8x128xf32>
    %46 = arith.maximumf %20, %5 : vector<8x128xf32>
    %47 = arith.subf %45, %46 : vector<8x128xf32>
    %cst_30 = arith.constant 0.000000e+00 : f32
    %48 = vector.broadcast %cst_30 : f32 to vector<8x128xf32>
    %49 = arith.maximumf %47, %48 : vector<8x128xf32>
    %50 = arith.minimumf %29, %14 : vector<8x128xf32>
    %51 = arith.maximumf %23, %8 : vector<8x128xf32>
    %52 = arith.subf %50, %51 : vector<8x128xf32>
    %cst_31 = arith.constant 0.000000e+00 : f32
    %53 = vector.broadcast %cst_31 : f32 to vector<8x128xf32>
    %54 = arith.maximumf %52, %53 : vector<8x128xf32>
    %55 = arith.mulf %49, %54 : vector<8x128xf32>
    %56 = arith.subf %26, %20 : vector<8x128xf32>
    %57 = arith.subf %29, %23 : vector<8x128xf32>
    %58 = arith.mulf %56, %57 : vector<8x128xf32>
    %59 = arith.addf %58, %44 : vector<8x128xf32>
    %60 = arith.subf %59, %55 : vector<8x128xf32>
    %61 = arith.divf %55, %60 : vector<8x128xf32>
    %62 = arith.minimumf %38, %11 : vector<8x128xf32>
    %63 = arith.maximumf %32, %5 : vector<8x128xf32>
    %64 = arith.subf %62, %63 : vector<8x128xf32>
    %cst_32 = arith.constant 0.000000e+00 : f32
    %65 = vector.broadcast %cst_32 : f32 to vector<8x128xf32>
    %66 = arith.maximumf %64, %65 : vector<8x128xf32>
    %67 = arith.minimumf %41, %14 : vector<8x128xf32>
    %68 = arith.maximumf %35, %8 : vector<8x128xf32>
    %69 = arith.subf %67, %68 : vector<8x128xf32>
    %cst_33 = arith.constant 0.000000e+00 : f32
    %70 = vector.broadcast %cst_33 : f32 to vector<8x128xf32>
    %71 = arith.maximumf %69, %70 : vector<8x128xf32>
    %72 = arith.mulf %66, %71 : vector<8x128xf32>
    %73 = arith.subf %38, %32 : vector<8x128xf32>
    %74 = arith.subf %41, %35 : vector<8x128xf32>
    %75 = arith.mulf %73, %74 : vector<8x128xf32>
    %76 = arith.addf %75, %44 : vector<8x128xf32>
    %77 = arith.subf %76, %72 : vector<8x128xf32>
    %78 = arith.divf %72, %77 : vector<8x128xf32>
    %79 = arith.cmpf oge, %61, %78 : vector<8x128xf32>
    %c1_34 = arith.constant 1 : index
    %c5_35 = arith.constant 5 : index
    %80 = arith.index_cast %2 : i32 to index
    %c0_36 = arith.constant 0 : index
    %81 = vector.load %arg1[%c1_34, %c5_35, %80, %c0_36] : memref<2x30x8x128xf32, #tpu.memory_space<vmem>>, vector<1x1x8x128xf32>
    %82 = vector.shape_cast %81 : vector<1x1x8x128xf32> to vector<8x128xf32>
    %c1_37 = arith.constant 1 : index
    %c6_38 = arith.constant 6 : index
    %83 = arith.index_cast %2 : i32 to index
    %c0_39 = arith.constant 0 : index
    %84 = vector.load %arg1[%c1_37, %c6_38, %83, %c0_39] : memref<2x30x8x128xf32, #tpu.memory_space<vmem>>, vector<1x1x8x128xf32>
    %85 = vector.shape_cast %84 : vector<1x1x8x128xf32> to vector<8x128xf32>
    %c1_40 = arith.constant 1 : index
    %c7_41 = arith.constant 7 : index
    %86 = arith.index_cast %2 : i32 to index
    %c0_42 = arith.constant 0 : index
    %87 = vector.load %arg1[%c1_40, %c7_41, %86, %c0_42] : memref<2x30x8x128xf32, #tpu.memory_space<vmem>>, vector<1x1x8x128xf32>
    %88 = vector.shape_cast %87 : vector<1x1x8x128xf32> to vector<8x128xf32>
    %c1_43 = arith.constant 1 : index
    %c8_44 = arith.constant 8 : index
    %89 = arith.index_cast %2 : i32 to index
    %c0_45 = arith.constant 0 : index
    %90 = vector.load %arg1[%c1_43, %c8_44, %89, %c0_45] : memref<2x30x8x128xf32, #tpu.memory_space<vmem>>, vector<1x1x8x128xf32>
    %91 = vector.shape_cast %90 : vector<1x1x8x128xf32> to vector<8x128xf32>
    %92 = arith.subf %20, %5 : vector<8x128xf32>
    %93 = arith.mulf %92, %92 : vector<8x128xf32>
    %94 = arith.subf %23, %8 : vector<8x128xf32>
    %95 = arith.mulf %94, %94 : vector<8x128xf32>
    %96 = arith.addf %93, %95 : vector<8x128xf32>
    %97 = arith.subf %32, %82 : vector<8x128xf32>
    %98 = arith.mulf %97, %97 : vector<8x128xf32>
    %99 = arith.subf %35, %85 : vector<8x128xf32>
    %100 = arith.mulf %99, %99 : vector<8x128xf32>
    %101 = arith.addf %98, %100 : vector<8x128xf32>
    %102 = arith.select %79, %96, %101 : vector<8x128xi1>, vector<8x128xf32>
    %103 = math.sqrt %26 : vector<8x128xf32>
    %104 = math.sqrt %11 : vector<8x128xf32>
    %105 = arith.subf %103, %104 : vector<8x128xf32>
    %106 = arith.mulf %105, %105 : vector<8x128xf32>
    %107 = math.sqrt %29 : vector<8x128xf32>
    %108 = math.sqrt %14 : vector<8x128xf32>
    %109 = arith.subf %107, %108 : vector<8x128xf32>
    %110 = arith.mulf %109, %109 : vector<8x128xf32>
    %111 = arith.addf %106, %110 : vector<8x128xf32>
    %112 = math.sqrt %38 : vector<8x128xf32>
    %113 = math.sqrt %88 : vector<8x128xf32>
    %114 = arith.subf %112, %113 : vector<8x128xf32>
    %115 = arith.mulf %114, %114 : vector<8x128xf32>
    %116 = math.sqrt %41 : vector<8x128xf32>
    %117 = math.sqrt %91 : vector<8x128xf32>
    %118 = arith.subf %116, %117 : vector<8x128xf32>
    %119 = arith.mulf %118, %118 : vector<8x128xf32>
    %120 = arith.addf %115, %119 : vector<8x128xf32>
    %121 = arith.select %79, %111, %120 : vector<8x128xi1>, vector<8x128xf32>
    %c0_46 = arith.constant 0 : index
    %c4_47 = arith.constant 4 : index
    %122 = arith.index_cast %2 : i32 to index
    %c0_48 = arith.constant 0 : index
    %123 = vector.load %arg1[%c0_46, %c4_47, %122, %c0_48] : memref<2x30x8x128xf32, #tpu.memory_space<vmem>>, vector<1x1x8x128xf32>
    %124 = vector.shape_cast %123 : vector<1x1x8x128xf32> to vector<8x128xf32>
    %125 = arith.subf %124, %17 : vector<8x128xf32>
    %126 = arith.mulf %125, %125 : vector<8x128xf32>
    %c0_49 = arith.constant 0 : index
    %c9 = arith.constant 9 : index
    %127 = arith.index_cast %2 : i32 to index
    %c0_50 = arith.constant 0 : index
    %128 = vector.load %arg1[%c0_49, %c9, %127, %c0_50] : memref<2x30x8x128xf32, #tpu.memory_space<vmem>>, vector<1x1x8x128xf32>
    %129 = vector.shape_cast %128 : vector<1x1x8x128xf32> to vector<8x128xf32>
    %c1_51 = arith.constant 1 : index
    %c9_52 = arith.constant 9 : index
    %130 = arith.index_cast %2 : i32 to index
    %c0_53 = arith.constant 0 : index
    %131 = vector.load %arg1[%c1_51, %c9_52, %130, %c0_53] : memref<2x30x8x128xf32, #tpu.memory_space<vmem>>, vector<1x1x8x128xf32>
    %132 = vector.shape_cast %131 : vector<1x1x8x128xf32> to vector<8x128xf32>
    %133 = arith.subf %129, %132 : vector<8x128xf32>
    %134 = arith.mulf %133, %133 : vector<8x128xf32>
    %135 = arith.select %79, %126, %134 : vector<8x128xi1>, vector<8x128xf32>
    %c0_54 = arith.constant 0 : index
    %c10 = arith.constant 10 : index
    %136 = arith.index_cast %2 : i32 to index
    %c0_55 = arith.constant 0 : index
    %137 = vector.load %arg1[%c0_54, %c10, %136, %c0_55] : memref<2x30x8x128xf32, #tpu.memory_space<vmem>>, vector<1x1x8x128xf32>
    %138 = vector.shape_cast %137 : vector<1x1x8x128xf32> to vector<8x128xf32>
    %c1_56 = arith.constant 1 : index
    %c10_57 = arith.constant 10 : index
    %139 = arith.index_cast %2 : i32 to index
    %c0_58 = arith.constant 0 : index
    %140 = vector.load %arg1[%c1_56, %c10_57, %139, %c0_58] : memref<2x30x8x128xf32, #tpu.memory_space<vmem>>, vector<1x1x8x128xf32>
    %141 = vector.shape_cast %140 : vector<1x1x8x128xf32> to vector<8x128xf32>
    %142 = arith.subf %138, %141 : vector<8x128xf32>
    %143 = arith.mulf %142, %142 : vector<8x128xf32>
    %c0_59 = arith.constant 0 : index
    %c11 = arith.constant 11 : index
    %144 = arith.index_cast %2 : i32 to index
    %c0_60 = arith.constant 0 : index
    %145 = vector.load %arg1[%c0_59, %c11, %144, %c0_60] : memref<2x30x8x128xf32, #tpu.memory_space<vmem>>, vector<1x1x8x128xf32>
    %146 = vector.shape_cast %145 : vector<1x1x8x128xf32> to vector<8x128xf32>
    %c1_61 = arith.constant 1 : index
    %c11_62 = arith.constant 11 : index
    %147 = arith.index_cast %2 : i32 to index
    %c0_63 = arith.constant 0 : index
    %148 = vector.load %arg1[%c1_61, %c11_62, %147, %c0_63] : memref<2x30x8x128xf32, #tpu.memory_space<vmem>>, vector<1x1x8x128xf32>
    %149 = vector.shape_cast %148 : vector<1x1x8x128xf32> to vector<8x128xf32>
    %150 = arith.subf %146, %149 : vector<8x128xf32>
    %151 = arith.mulf %150, %150 : vector<8x128xf32>
    %152 = arith.addf %143, %151 : vector<8x128xf32>
    %c0_64 = arith.constant 0 : index
    %c12 = arith.constant 12 : index
    %153 = arith.index_cast %2 : i32 to index
    %c0_65 = arith.constant 0 : index
    %154 = vector.load %arg1[%c0_64, %c12, %153, %c0_65] : memref<2x30x8x128xf32, #tpu.memory_space<vmem>>, vector<1x1x8x128xf32>
    %155 = vector.shape_cast %154 : vector<1x1x8x128xf32> to vector<8x128xf32>
    %c1_66 = arith.constant 1 : index
    %c12_67 = arith.constant 12 : index
    %156 = arith.index_cast %2 : i32 to index
    %c0_68 = arith.constant 0 : index
    %157 = vector.load %arg1[%c1_66, %c12_67, %156, %c0_68] : memref<2x30x8x128xf32, #tpu.memory_space<vmem>>, vector<1x1x8x128xf32>
    %158 = vector.shape_cast %157 : vector<1x1x8x128xf32> to vector<8x128xf32>
    %159 = arith.subf %155, %158 : vector<8x128xf32>
    %160 = arith.mulf %159, %159 : vector<8x128xf32>
    %161 = arith.addf %152, %160 : vector<8x128xf32>
    %c0_69 = arith.constant 0 : index
    %c13 = arith.constant 13 : index
    %162 = arith.index_cast %2 : i32 to index
    %c0_70 = arith.constant 0 : index
    %163 = vector.load %arg1[%c0_69, %c13, %162, %c0_70] : memref<2x30x8x128xf32, #tpu.memory_space<vmem>>, vector<1x1x8x128xf32>
    %164 = vector.shape_cast %163 : vector<1x1x8x128xf32> to vector<8x128xf32>
    %c1_71 = arith.constant 1 : index
    %c13_72 = arith.constant 13 : index
    %165 = arith.index_cast %2 : i32 to index
    %c0_73 = arith.constant 0 : index
    %166 = vector.load %arg1[%c1_71, %c13_72, %165, %c0_73] : memref<2x30x8x128xf32, #tpu.memory_space<vmem>>, vector<1x1x8x128xf32>
    %167 = vector.shape_cast %166 : vector<1x1x8x128xf32> to vector<8x128xf32>
    %168 = arith.subf %164, %167 : vector<8x128xf32>
    %169 = arith.mulf %168, %168 : vector<8x128xf32>
    %170 = arith.addf %161, %169 : vector<8x128xf32>
    %c0_74 = arith.constant 0 : index
    %c14 = arith.constant 14 : index
    %171 = arith.index_cast %2 : i32 to index
    %c0_75 = arith.constant 0 : index
    %172 = vector.load %arg1[%c0_74, %c14, %171, %c0_75] : memref<2x30x8x128xf32, #tpu.memory_space<vmem>>, vector<1x1x8x128xf32>
    %173 = vector.shape_cast %172 : vector<1x1x8x128xf32> to vector<8x128xf32>
    %c1_76 = arith.constant 1 : index
    %c14_77 = arith.constant 14 : index
    %174 = arith.index_cast %2 : i32 to index
    %c0_78 = arith.constant 0 : index
    %175 = vector.load %arg1[%c1_76, %c14_77, %174, %c0_78] : memref<2x30x8x128xf32, #tpu.memory_space<vmem>>, vector<1x1x8x128xf32>
    %176 = vector.shape_cast %175 : vector<1x1x8x128xf32> to vector<8x128xf32>
    %177 = arith.subf %173, %176 : vector<8x128xf32>
    %178 = arith.mulf %177, %177 : vector<8x128xf32>
    %179 = arith.addf %170, %178 : vector<8x128xf32>
    %c0_79 = arith.constant 0 : index
    %c15 = arith.constant 15 : index
    %180 = arith.index_cast %2 : i32 to index
    %c0_80 = arith.constant 0 : index
    %181 = vector.load %arg1[%c0_79, %c15, %180, %c0_80] : memref<2x30x8x128xf32, #tpu.memory_space<vmem>>, vector<1x1x8x128xf32>
    %182 = vector.shape_cast %181 : vector<1x1x8x128xf32> to vector<8x128xf32>
    %c1_81 = arith.constant 1 : index
    %c15_82 = arith.constant 15 : index
    %183 = arith.index_cast %2 : i32 to index
    %c0_83 = arith.constant 0 : index
    %184 = vector.load %arg1[%c1_81, %c15_82, %183, %c0_83] : memref<2x30x8x128xf32, #tpu.memory_space<vmem>>, vector<1x1x8x128xf32>
    %185 = vector.shape_cast %184 : vector<1x1x8x128xf32> to vector<8x128xf32>
    %186 = arith.subf %182, %185 : vector<8x128xf32>
    %187 = arith.mulf %186, %186 : vector<8x128xf32>
    %188 = arith.addf %179, %187 : vector<8x128xf32>
    %c0_84 = arith.constant 0 : index
    %c16 = arith.constant 16 : index
    %189 = arith.index_cast %2 : i32 to index
    %c0_85 = arith.constant 0 : index
    %190 = vector.load %arg1[%c0_84, %c16, %189, %c0_85] : memref<2x30x8x128xf32, #tpu.memory_space<vmem>>, vector<1x1x8x128xf32>
    %191 = vector.shape_cast %190 : vector<1x1x8x128xf32> to vector<8x128xf32>
    %c1_86 = arith.constant 1 : index
    %c16_87 = arith.constant 16 : index
    %192 = arith.index_cast %2 : i32 to index
    %c0_88 = arith.constant 0 : index
    %193 = vector.load %arg1[%c1_86, %c16_87, %192, %c0_88] : memref<2x30x8x128xf32, #tpu.memory_space<vmem>>, vector<1x1x8x128xf32>
    %194 = vector.shape_cast %193 : vector<1x1x8x128xf32> to vector<8x128xf32>
    %195 = arith.subf %191, %194 : vector<8x128xf32>
    %196 = arith.mulf %195, %195 : vector<8x128xf32>
    %197 = arith.addf %188, %196 : vector<8x128xf32>
    %c0_89 = arith.constant 0 : index
    %c17 = arith.constant 17 : index
    %198 = arith.index_cast %2 : i32 to index
    %c0_90 = arith.constant 0 : index
    %199 = vector.load %arg1[%c0_89, %c17, %198, %c0_90] : memref<2x30x8x128xf32, #tpu.memory_space<vmem>>, vector<1x1x8x128xf32>
    %200 = vector.shape_cast %199 : vector<1x1x8x128xf32> to vector<8x128xf32>
    %c1_91 = arith.constant 1 : index
    %c17_92 = arith.constant 17 : index
    %201 = arith.index_cast %2 : i32 to index
    %c0_93 = arith.constant 0 : index
    %202 = vector.load %arg1[%c1_91, %c17_92, %201, %c0_93] : memref<2x30x8x128xf32, #tpu.memory_space<vmem>>, vector<1x1x8x128xf32>
    %203 = vector.shape_cast %202 : vector<1x1x8x128xf32> to vector<8x128xf32>
    %204 = arith.subf %200, %203 : vector<8x128xf32>
    %205 = arith.mulf %204, %204 : vector<8x128xf32>
    %206 = arith.addf %197, %205 : vector<8x128xf32>
    %c0_94 = arith.constant 0 : index
    %c18 = arith.constant 18 : index
    %207 = arith.index_cast %2 : i32 to index
    %c0_95 = arith.constant 0 : index
    %208 = vector.load %arg1[%c0_94, %c18, %207, %c0_95] : memref<2x30x8x128xf32, #tpu.memory_space<vmem>>, vector<1x1x8x128xf32>
    %209 = vector.shape_cast %208 : vector<1x1x8x128xf32> to vector<8x128xf32>
    %c1_96 = arith.constant 1 : index
    %c18_97 = arith.constant 18 : index
    %210 = arith.index_cast %2 : i32 to index
    %c0_98 = arith.constant 0 : index
    %211 = vector.load %arg1[%c1_96, %c18_97, %210, %c0_98] : memref<2x30x8x128xf32, #tpu.memory_space<vmem>>, vector<1x1x8x128xf32>
    %212 = vector.shape_cast %211 : vector<1x1x8x128xf32> to vector<8x128xf32>
    %213 = arith.subf %209, %212 : vector<8x128xf32>
    %214 = arith.mulf %213, %213 : vector<8x128xf32>
    %215 = arith.addf %206, %214 : vector<8x128xf32>
    %c0_99 = arith.constant 0 : index
    %c19 = arith.constant 19 : index
    %216 = arith.index_cast %2 : i32 to index
    %c0_100 = arith.constant 0 : index
    %217 = vector.load %arg1[%c0_99, %c19, %216, %c0_100] : memref<2x30x8x128xf32, #tpu.memory_space<vmem>>, vector<1x1x8x128xf32>
    %218 = vector.shape_cast %217 : vector<1x1x8x128xf32> to vector<8x128xf32>
    %c1_101 = arith.constant 1 : index
    %c19_102 = arith.constant 19 : index
    %219 = arith.index_cast %2 : i32 to index
    %c0_103 = arith.constant 0 : index
    %220 = vector.load %arg1[%c1_101, %c19_102, %219, %c0_103] : memref<2x30x8x128xf32, #tpu.memory_space<vmem>>, vector<1x1x8x128xf32>
    %221 = vector.shape_cast %220 : vector<1x1x8x128xf32> to vector<8x128xf32>
    %222 = arith.subf %218, %221 : vector<8x128xf32>
    %223 = arith.mulf %222, %222 : vector<8x128xf32>
    %224 = arith.addf %215, %223 : vector<8x128xf32>
    %c0_104 = arith.constant 0 : index
    %c20 = arith.constant 20 : index
    %225 = arith.index_cast %2 : i32 to index
    %c0_105 = arith.constant 0 : index
    %226 = vector.load %arg1[%c0_104, %c20, %225, %c0_105] : memref<2x30x8x128xf32, #tpu.memory_space<vmem>>, vector<1x1x8x128xf32>
    %227 = vector.shape_cast %226 : vector<1x1x8x128xf32> to vector<8x128xf32>
    %c1_106 = arith.constant 1 : index
    %c20_107 = arith.constant 20 : index
    %228 = arith.index_cast %2 : i32 to index
    %c0_108 = arith.constant 0 : index
    %229 = vector.load %arg1[%c1_106, %c20_107, %228, %c0_108] : memref<2x30x8x128xf32, #tpu.memory_space<vmem>>, vector<1x1x8x128xf32>
    %230 = vector.shape_cast %229 : vector<1x1x8x128xf32> to vector<8x128xf32>
    %231 = arith.subf %227, %230 : vector<8x128xf32>
    %232 = arith.mulf %231, %231 : vector<8x128xf32>
    %233 = arith.addf %224, %232 : vector<8x128xf32>
    %c0_109 = arith.constant 0 : index
    %c21 = arith.constant 21 : index
    %234 = arith.index_cast %2 : i32 to index
    %c0_110 = arith.constant 0 : index
    %235 = vector.load %arg1[%c0_109, %c21, %234, %c0_110] : memref<2x30x8x128xf32, #tpu.memory_space<vmem>>, vector<1x1x8x128xf32>
    %236 = vector.shape_cast %235 : vector<1x1x8x128xf32> to vector<8x128xf32>
    %c1_111 = arith.constant 1 : index
    %c21_112 = arith.constant 21 : index
    %237 = arith.index_cast %2 : i32 to index
    %c0_113 = arith.constant 0 : index
    %238 = vector.load %arg1[%c1_111, %c21_112, %237, %c0_113] : memref<2x30x8x128xf32, #tpu.memory_space<vmem>>, vector<1x1x8x128xf32>
    %239 = vector.shape_cast %238 : vector<1x1x8x128xf32> to vector<8x128xf32>
    %240 = arith.subf %236, %239 : vector<8x128xf32>
    %241 = arith.mulf %240, %240 : vector<8x128xf32>
    %242 = arith.addf %233, %241 : vector<8x128xf32>
    %c0_114 = arith.constant 0 : index
    %c22 = arith.constant 22 : index
    %243 = arith.index_cast %2 : i32 to index
    %c0_115 = arith.constant 0 : index
    %244 = vector.load %arg1[%c0_114, %c22, %243, %c0_115] : memref<2x30x8x128xf32, #tpu.memory_space<vmem>>, vector<1x1x8x128xf32>
    %245 = vector.shape_cast %244 : vector<1x1x8x128xf32> to vector<8x128xf32>
    %c1_116 = arith.constant 1 : index
    %c22_117 = arith.constant 22 : index
    %246 = arith.index_cast %2 : i32 to index
    %c0_118 = arith.constant 0 : index
    %247 = vector.load %arg1[%c1_116, %c22_117, %246, %c0_118] : memref<2x30x8x128xf32, #tpu.memory_space<vmem>>, vector<1x1x8x128xf32>
    %248 = vector.shape_cast %247 : vector<1x1x8x128xf32> to vector<8x128xf32>
    %249 = arith.subf %245, %248 : vector<8x128xf32>
    %250 = arith.mulf %249, %249 : vector<8x128xf32>
    %251 = arith.addf %242, %250 : vector<8x128xf32>
    %c0_119 = arith.constant 0 : index
    %c23 = arith.constant 23 : index
    %252 = arith.index_cast %2 : i32 to index
    %c0_120 = arith.constant 0 : index
    %253 = vector.load %arg1[%c0_119, %c23, %252, %c0_120] : memref<2x30x8x128xf32, #tpu.memory_space<vmem>>, vector<1x1x8x128xf32>
    %254 = vector.shape_cast %253 : vector<1x1x8x128xf32> to vector<8x128xf32>
    %c1_121 = arith.constant 1 : index
    %c23_122 = arith.constant 23 : index
    %255 = arith.index_cast %2 : i32 to index
    %c0_123 = arith.constant 0 : index
    %256 = vector.load %arg1[%c1_121, %c23_122, %255, %c0_123] : memref<2x30x8x128xf32, #tpu.memory_space<vmem>>, vector<1x1x8x128xf32>
    %257 = vector.shape_cast %256 : vector<1x1x8x128xf32> to vector<8x128xf32>
    %258 = arith.subf %254, %257 : vector<8x128xf32>
    %259 = arith.mulf %258, %258 : vector<8x128xf32>
    %260 = arith.addf %251, %259 : vector<8x128xf32>
    %c0_124 = arith.constant 0 : index
    %c24 = arith.constant 24 : index
    %261 = arith.index_cast %2 : i32 to index
    %c0_125 = arith.constant 0 : index
    %262 = vector.load %arg1[%c0_124, %c24, %261, %c0_125] : memref<2x30x8x128xf32, #tpu.memory_space<vmem>>, vector<1x1x8x128xf32>
    %263 = vector.shape_cast %262 : vector<1x1x8x128xf32> to vector<8x128xf32>
    %c1_126 = arith.constant 1 : index
    %c24_127 = arith.constant 24 : index
    %264 = arith.index_cast %2 : i32 to index
    %c0_128 = arith.constant 0 : index
    %265 = vector.load %arg1[%c1_126, %c24_127, %264, %c0_128] : memref<2x30x8x128xf32, #tpu.memory_space<vmem>>, vector<1x1x8x128xf32>
    %266 = vector.shape_cast %265 : vector<1x1x8x128xf32> to vector<8x128xf32>
    %267 = arith.subf %263, %266 : vector<8x128xf32>
    %268 = arith.mulf %267, %267 : vector<8x128xf32>
    %269 = arith.addf %260, %268 : vector<8x128xf32>
    %c0_129 = arith.constant 0 : index
    %c25 = arith.constant 25 : index
    %270 = arith.index_cast %2 : i32 to index
    %c0_130 = arith.constant 0 : index
    %271 = vector.load %arg1[%c0_129, %c25, %270, %c0_130] : memref<2x30x8x128xf32, #tpu.memory_space<vmem>>, vector<1x1x8x128xf32>
    %272 = vector.shape_cast %271 : vector<1x1x8x128xf32> to vector<8x128xf32>
    %c1_131 = arith.constant 1 : index
    %c25_132 = arith.constant 25 : index
    %273 = arith.index_cast %2 : i32 to index
    %c0_133 = arith.constant 0 : index
    %274 = vector.load %arg1[%c1_131, %c25_132, %273, %c0_133] : memref<2x30x8x128xf32, #tpu.memory_space<vmem>>, vector<1x1x8x128xf32>
    %275 = vector.shape_cast %274 : vector<1x1x8x128xf32> to vector<8x128xf32>
    %276 = arith.subf %272, %275 : vector<8x128xf32>
    %277 = arith.mulf %276, %276 : vector<8x128xf32>
    %278 = arith.addf %269, %277 : vector<8x128xf32>
    %c0_134 = arith.constant 0 : index
    %c26 = arith.constant 26 : index
    %279 = arith.index_cast %2 : i32 to index
    %c0_135 = arith.constant 0 : index
    %280 = vector.load %arg1[%c0_134, %c26, %279, %c0_135] : memref<2x30x8x128xf32, #tpu.memory_space<vmem>>, vector<1x1x8x128xf32>
    %281 = vector.shape_cast %280 : vector<1x1x8x128xf32> to vector<8x128xf32>
    %c1_136 = arith.constant 1 : index
    %c26_137 = arith.constant 26 : index
    %282 = arith.index_cast %2 : i32 to index
    %c0_138 = arith.constant 0 : index
    %283 = vector.load %arg1[%c1_136, %c26_137, %282, %c0_138] : memref<2x30x8x128xf32, #tpu.memory_space<vmem>>, vector<1x1x8x128xf32>
    %284 = vector.shape_cast %283 : vector<1x1x8x128xf32> to vector<8x128xf32>
    %285 = arith.subf %281, %284 : vector<8x128xf32>
    %286 = arith.mulf %285, %285 : vector<8x128xf32>
    %287 = arith.addf %278, %286 : vector<8x128xf32>
    %c0_139 = arith.constant 0 : index
    %c27 = arith.constant 27 : index
    %288 = arith.index_cast %2 : i32 to index
    %c0_140 = arith.constant 0 : index
    %289 = vector.load %arg1[%c0_139, %c27, %288, %c0_140] : memref<2x30x8x128xf32, #tpu.memory_space<vmem>>, vector<1x1x8x128xf32>
    %290 = vector.shape_cast %289 : vector<1x1x8x128xf32> to vector<8x128xf32>
    %c1_141 = arith.constant 1 : index
    %c27_142 = arith.constant 27 : index
    %291 = arith.index_cast %2 : i32 to index
    %c0_143 = arith.constant 0 : index
    %292 = vector.load %arg1[%c1_141, %c27_142, %291, %c0_143] : memref<2x30x8x128xf32, #tpu.memory_space<vmem>>, vector<1x1x8x128xf32>
    %293 = vector.shape_cast %292 : vector<1x1x8x128xf32> to vector<8x128xf32>
    %294 = arith.subf %290, %293 : vector<8x128xf32>
    %295 = arith.mulf %294, %294 : vector<8x128xf32>
    %296 = arith.addf %287, %295 : vector<8x128xf32>
    %c0_144 = arith.constant 0 : index
    %c28 = arith.constant 28 : index
    %297 = arith.index_cast %2 : i32 to index
    %c0_145 = arith.constant 0 : index
    %298 = vector.load %arg1[%c0_144, %c28, %297, %c0_145] : memref<2x30x8x128xf32, #tpu.memory_space<vmem>>, vector<1x1x8x128xf32>
    %299 = vector.shape_cast %298 : vector<1x1x8x128xf32> to vector<8x128xf32>
    %c1_146 = arith.constant 1 : index
    %c28_147 = arith.constant 28 : index
    %300 = arith.index_cast %2 : i32 to index
    %c0_148 = arith.constant 0 : index
    %301 = vector.load %arg1[%c1_146, %c28_147, %300, %c0_148] : memref<2x30x8x128xf32, #tpu.memory_space<vmem>>, vector<1x1x8x128xf32>
    %302 = vector.shape_cast %301 : vector<1x1x8x128xf32> to vector<8x128xf32>
    %303 = arith.subf %299, %302 : vector<8x128xf32>
    %304 = arith.mulf %303, %303 : vector<8x128xf32>
    %305 = arith.addf %296, %304 : vector<8x128xf32>
    %c0_149 = arith.constant 0 : index
    %c29 = arith.constant 29 : index
    %306 = arith.index_cast %2 : i32 to index
    %c0_150 = arith.constant 0 : index
    %307 = vector.load %arg1[%c0_149, %c29, %306, %c0_150] : memref<2x30x8x128xf32, #tpu.memory_space<vmem>>, vector<1x1x8x128xf32>
    %308 = vector.shape_cast %307 : vector<1x1x8x128xf32> to vector<8x128xf32>
    %c1_151 = arith.constant 1 : index
    %c29_152 = arith.constant 29 : index
    %309 = arith.index_cast %2 : i32 to index
    %c0_153 = arith.constant 0 : index
    %310 = vector.load %arg1[%c1_151, %c29_152, %309, %c0_153] : memref<2x30x8x128xf32, #tpu.memory_space<vmem>>, vector<1x1x8x128xf32>
    %311 = vector.shape_cast %310 : vector<1x1x8x128xf32> to vector<8x128xf32>
    %312 = arith.subf %308, %311 : vector<8x128xf32>
    %313 = arith.mulf %312, %312 : vector<8x128xf32>
    %314 = arith.addf %305, %313 : vector<8x128xf32>
    %315 = arith.addf %102, %121 : vector<8x128xf32>
    %cst_154 = arith.constant 5.000000e+00 : f32
    %316 = vector.broadcast %cst_154 : f32 to vector<8x128xf32>
    %317 = arith.mulf %316, %315 : vector<8x128xf32>
    %318 = arith.addf %317, %135 : vector<8x128xf32>
    %319 = arith.addf %318, %314 : vector<8x128xf32>
    %cst_155 = arith.constant 0.000000e+00 : f32
    %320 = vector.broadcast %cst_155 : f32 to vector<8x128xf32>
    %321 = arith.cmpf oeq, %17, %320 : vector<8x128xf32>
    %cst_156 = arith.constant 5.000000e-01 : f32
    %322 = vector.broadcast %cst_156 : f32 to vector<8x128xf32>
    %323 = arith.mulf %322, %135 : vector<8x128xf32>
    %cst_157 = arith.constant 0.000000e+00 : f32
    %324 = vector.broadcast %cst_157 : f32 to vector<8x128xf32>
    %325 = arith.select %321, %323, %324 : vector<8x128xi1>, vector<8x128xf32>
    %cst_158 = arith.constant 0.000000e+00 : f32
    %326 = vector.broadcast %cst_158 : f32 to vector<8x128xf32>
    %327 = arith.cmpf ogt, %17, %326 : vector<8x128xf32>
    %328 = arith.select %327, %319, %325 : vector<8x128xi1>, vector<8x128xf32>
    %329 = arith.addf %0, %328 : vector<8x128xf32>
    %c1_i32 = arith.constant 1 : i32
    %c0_159 = arith.constant 0 : index
    %c0_160 = arith.constant 0 : index
    %c0_161 = arith.constant 0 : index
    %330 = vector.load %arg2[%c0_159, %c0_160, %c0_161] : memref<1x8x128xf32, #tpu.memory_space<vmem>>, vector<1x8x128xf32>
    %331 = vector.shape_cast %330 : vector<1x8x128xf32> to vector<8x128xf32>
    %332 = vector.shape_cast %329 : vector<8x128xf32> to vector<1x8x128xf32>
    tpu.vector_store %arg2[%c0_159, %c0_160, %c0_161], %332 {strides = array<i32>} : memref<1x8x128xf32, #tpu.memory_space<vmem>>, vector<1x8x128xf32>,
    return
  }
  func.func @transform_0(%arg0: i32) -> (i32, i32, i32, i32) {
    %c0_i32 = arith.constant 0 : i32
    %c0_i32_0 = arith.constant 0 : i32
    %c0_i32_1 = arith.constant 0 : i32
    %c0_i32_2 = arith.constant 0 : i32
    return %c0_i32, %c0_i32_0, %arg0, %c0_i32_1 : i32, i32, i32, i32
  }
  func.func @transform_1(%arg0: i32) -> (i32, i32, i32) {
    %c0_i32 = arith.constant 0 : i32
    %c0_i32_0 = arith.constant 0 : i32
    %c0_i32_1 = arith.constant 0 : i32
    return %arg0, %c0_i32, %c0_i32_0 : i32, i32, i32
  }
}

</mosaic_0001>

<bundles_post_ra>
// kernel: yolo_loss.1
= control target key start
LH: loop header
LB: loop body
LE: loop exit
PB: predicated region body
PF: predicated region fallthrough
CT: control target
= control target key end

     0   :  { %s1067_s0 = inlined_call_operand.vmem [shape: f32[2,30,8,128], index: 0, kind: input, shape index: {}]   ;;  %s1068_s1 = inlined_call_operand.vmem [shape: f32[1,8,128], index: 1, kind: output, shape index: {}]  }
   0x1   :  { %v596_v0 = vld [vmem:[%s1067_s0 + $0xf0] sm:$0xff]  ;;  %v601_v1 = vld [vmem:[%s1067_s0 + $0xf8] sm:$0xff]  ;;  %v606_v2 = vld [vmem:[%s1067_s0 + $0x100] sm:$0xff] }
   0x2   :  { %v611_v3 = vld [vmem:[%s1067_s0 + $0x108] sm:$0xff]  ;;  %v27_v4 = vld [vmem:[%s1067_s0] sm:$0xff]  ;;  %v46_v5 = vsub.f32 %v606_v2, %v596_v0  ;;  %v626_v7 = vld [vmem:[%s1067_s0 + $0x10] sm:$0xff]  ;;  %563 = vrsqrt.f32 %v606_v2  ;;  %vm150_vm0 = vcmp.eq.f32.partialorder %v606_v2, inf  ;;  %vm152_vm1 = vcmp.eq.f32.partialorder %v606_v2, 0.0 }
   0x3   :  { %v621_v6 = vld [vmem:[%s1067_s0 + $0x8] sm:$0xff]  ;;  %v631_v8 = vld [vmem:[%s1067_s0 + $0x18] sm:$0xff]  ;;  %v47_v9 = vsub.f32 %v611_v3, %v601_v1  ;;  %v50_v10 = vmax.f32 %v27_v4, %v596_v0  ;;  %v645_v12 = vld [vmem:[%s1067_s0 + $0x30] sm:$0xff]  ;;  %v49_v14 = vmin.f32 %v626_v7, %v606_v2  ;;  %v58_v17 = vsub.f32 %v626_v7, %v27_v4 }
   0x4   :  { %v640_v11 = vld [vmem:[%s1067_s0 + $0x28] sm:$0xff]  ;;  %v650_v13 = vld [vmem:[%s1067_s0 + $0x38] sm:$0xff]  ;;  %v53_v15 = vmin.f32 %v631_v8, %v611_v3  ;;  %v54_v16 = vmax.f32 %v621_v6, %v601_v1  ;;  %v662_v18 = vld [vmem:[%s1067_s0 + $0x40] sm:$0xff]  ;;  %v59_v20 = vsub.f32 %v631_v8, %v621_v6  ;;  %v83_v26 = vmax.f32 %v645_v12, %v601_v1 }
   0x5   :  { %v48_v19 = vmul.f32 %v47_v9, %v46_v5  ;;  %v78_v21 = vmin.f32 %v650_v13, %v606_v2  ;;  %v79_v22 = vmax.f32 %v640_v11, %v596_v0  ;;  %v51_v23 = vsub.f32 %v49_v14, %v50_v10  ;;  %v697_v48 = vld [vmem:[%s1067_s0 + $0x128] sm:$0xff]  ;;  %v516_v59 = vld [vmem:[%s1067_s0 + $0x118] sm:$0xff] }
   0x6   :  { %v55_v24 = vsub.f32 %v53_v15, %v54_v16  ;;  %v82_v25 = vmin.f32 %v662_v18, %v611_v3  ;;  %v60_v27 = vmul.f32 %v59_v20, %v58_v17  ;;  %v87_v29 = vsub.f32 %v650_v13, %v640_v11 }
   0x7   :  { %v80_v28 = vsub.f32 %v78_v21, %v79_v22  ;;  %v88_v30 = vsub.f32 %v662_v18, %v645_v12  ;;  %v52_v31 = vmax.f32 %v51_v23, 0.0  ;;  %565 = vrsqrt.f32 %v626_v7 }
   0x8   :  { %v56_v32 = vmax.f32 %v55_v24, 0.0  ;;  %v84_v33 = vsub.f32 %v82_v25, %v83_v26  ;;  %v564_v34 = vpop.eup %563  ;;  %v61_v35 = vadd.f32 %v60_v27, %v48_v19  ;;  %567 = vrsqrt.f32 %v631_v8 }
   0x9   :  { %v81_v37 = vmax.f32 %v80_v28, 0.0  ;;  %v89_v39 = vmul.f32 %v88_v30, %v87_v29  ;;  %v144_v43 = vmul.f32 %v564_v34, %v606_v2  ;;  %v120_v55 = vsub.f32 %v27_v4, %v596_v0  ;;  %v517_v0 = vld [vmem:[%s1067_s0 + $0x120] sm:$0xff] }
   0xa   :  { %v678_v36 = vmul.f32 %v56_v32, %v52_v31  ;;  %v85_v38 = vmax.f32 %v84_v33, 0.0  ;;  %v153_v4 = vand.u32 2147483648, %v606_v2  ;;  %v739_v16 = vsub.f32 %v621_v6, %v601_v1  ;;  %v768_v32 = vld [vmem:[%s1067_s0 + $0x130] sm:$0xff] }
   0xb   :  { %v90_v42 = vadd.f32 %v89_v39, %v48_v19  ;;  %v145_v46 = vmul.f32 %v564_v34, %v144_v43  ;;  %v735_v15 = vmul.f32 %v120_v55, %v120_v55  ;;  %v742_v17 = vsub.f32 %v640_v11, %v516_v59  ;;  %v523_v59 = vld [vmem:[%s1067_s0 + $0x50] sm:$0xff] }
   0xc   :  { %v682_v40 = vsub.f32 %v61_v35, %v678_v36  ;;  %v684_v41 = vmul.f32 %v85_v38, %v81_v37  ;;  %v748_v23 = vsub.f32 %v645_v12, %v517_v0  ;;  %v141_v25 = vand.u32 2147483648, %v626_v7 }
   0xd   :  { %v566_v44 = vpop.eup %565  ;;  %v146_v50 = vmul.f32 0.5, %v145_v46  ;;  %vm138_vm3 = vcmp.eq.f32.partialorder %v626_v7, inf  ;;  %vm140_vm4 = vcmp.eq.f32.partialorder %v626_v7, 0.0  ;;  %vm164_vm5 = vcmp.eq.f32.partialorder %v631_v8, inf }
   0xe   :  { %569 = vrcp.f32 %v682_v40  ;;  %v690_v45 = vsub.f32 %v90_v42, %v684_v41  ;;  %v132_v47 = vmul.f32 %v566_v44, %v626_v7  ;;  %v700_v49 = vpop.eup %567  ;;  %v74_v14 = vand.u32 2147483648, %v682_v40 }
   0xf   :  { %571 = vrsqrt.f32 %v611_v3  ;;  %v158_v51 = vmul.f32 %v700_v49, %v631_v8  ;;  %v147_v60 = vsub.f32 1.5, %v146_v50  ;;  %vm68_vm2 = vweird.f32 %v682_v40 }
  0x10   :  { %573 = vrsqrt.f32 %v650_v13  ;;  %v133_v53 = vmul.f32 %v566_v44, %v132_v47  ;;  %v72_v6 = vand.u32 2147483647, %v682_v40  ;;  %v759_v28 = vor.u32 1.1754944e-38, %v74_v14 }
  0x11   :  { %575 = vrcp.f32 %v690_v45  ;;  %v159_v61 = vmul.f32 %v700_v49, %v158_v51  ;;  %v148_v20 = vmul.f32 %v564_v34, %v147_v60  ;;  %v101_v12 = vand.u32 2147483647, %v690_v45  ;;  %v524_v60 = vld [vmem:[%s1067_s0 + $0x140] sm:$0xff] }
  0x12   :  { %577 = vrsqrt.f32 %v697_v48  ;;  %v134_v62 = vmul.f32 0.5, %v133_v53  ;;  %v103_v37 = vand.u32 2147483648, %v690_v45  ;;  %v167_v39 = vand.u32 2147483648, %v631_v8 }
  0x13   :  { %579 = vrsqrt.f32 %v662_v18  ;;  %v160_v21 = vmul.f32 0.5, %v159_v61  ;;  %v149_v33 = vmul.f32 %v606_v2, %v148_v20  ;;  %vm176_vm7 = vcmp.eq.f32.partialorder %v611_v3, inf  ;;  %v545_v61 = vld [vmem:[%s1067_s0 + $0xa8] sm:$0xff] }
  0x14   :  { %v705_v52 = vpop.eup %569  ;;  %v135_v24 = vsub.f32 1.5, %v134_v62  ;;  %v179_v50 = vand.u32 2147483648, %v611_v3  ;;  %581 = vrsqrt.f32 %v768_v32  ;;  %vm191_vm9 = vcmp.eq.f32.partialorder %v650_v13, inf }
  0x15   :  { %v708_v54 = vpop.eup %571  ;;  %v64_v58 = vmul.f32 %v705_v52, %v682_v40  ;;  %v161_v34 = vsub.f32 1.5, %v160_v21  ;;  %vm69_vm6 = vweird.f32 %v705_v52  ;;  %v151_v55 = vsel %vm150_vm0, %v606_v2, %v149_v33  ;;  %v527_v21 = vld [vmem:[%s1067_s0 + $0x60] sm:$0xff]  ;;  %v533_v40 = vld [vmem:[%s1067_s0 + $0x78] sm:$0xff] }
  0x16   :  { %v170_v56 = vmul.f32 %v708_v54, %v611_v3  ;;  %v713_v57 = vpop.eup %573  ;;  %v136_v38 = vmul.f32 %v566_v44, %v135_v24  ;;  %vm798_vm8 = vmor %vm68_vm2, %vm69_vm6  ;;  %vm166_vm10 = vcmp.eq.f32.partialorder %v631_v8, 0.0  ;;  %vm178_vm11 = vcmp.eq.f32.partialorder %v611_v3, 0.0 }
  0x17   :  { %v722_v63 = vpop.eup %575  ;;  %v185_v9 = vmul.f32 %v713_v57, %v650_v13  ;;  %v65_v19 = vsub.f32 1.0, %v64_v58  ;;  %vm203_vm12 = vcmp.eq.f32.partialorder %v697_v48, inf  ;;  %v206_v20 = vand.u32 2147483648, %v697_v48 }
  0x18   :  { %v171_v5 = vmul.f32 %v708_v54, %v170_v56  ;;  %v732_v10 = vpop.eup %577  ;;  %v93_v11 = vmul.f32 %v722_v63, %v690_v45  ;;  %v162_v56 = vmul.f32 %v700_v49, %v161_v34  ;;  %v137_v62 = vmul.f32 %v626_v7, %v136_v38 }
  0x19   :  { %v186_v22 = vmul.f32 %v713_v57, %v185_v9  ;;  %v751_v1 = vpop.eup %579  ;;  %v197_v27 = vmul.f32 %v732_v10, %v697_v48  ;;  %v66_v31 = vmul.f32 %v705_v52, %v65_v19  ;;  %v194_v49 = vand.u32 2147483648, %v650_v13  ;;  %v526_v9 = vld [vmem:[%s1067_s0 + $0x148] sm:$0xff] }
  0x1a   :  { %v172_v26 = vmul.f32 0.5, %v171_v5  ;;  %v211_v30 = vmul.f32 %v751_v1, %v662_v18  ;;  %v94_v43 = vsub.f32 1.0, %v93_v11  ;;  %v525_v5 = vld [vmem:[%s1067_s0 + $0x58] sm:$0xff]  ;;  %vm97_vm13 = vweird.f32 %v690_v45 }
  0x1b   :  { %v187_v29 = vmul.f32 0.5, %v186_v22  ;;  %v198_v35 = vmul.f32 %v732_v10, %v197_v27  ;;  %v782_v44 = vadd.f32 %v705_v52, %v66_v31  ;;  %v528_v22 = vld [vmem:[%s1067_s0 + $0x150] sm:$0xff]  ;;  %vm98_vm14 = vweird.f32 %v722_v63 }
  0x1c   :  { %v212_v42 = vmul.f32 %v751_v1, %v211_v30  ;;  %v173_v46 = vsub.f32 1.5, %v172_v26  ;;  %v95_v14 = vmul.f32 %v722_v63, %v94_v43  ;;  %v257_v26 = vsub.f32 %v523_v59, %v524_v60  ;;  %v536_v59 = vld [vmem:[%s1067_s0 + $0x170] sm:$0xff]  ;;  %vm941_vm6 = vmor %vm97_vm13, %vm98_vm14 }
  0x1d   :  { %v199_v47 = vmul.f32 0.5, %v198_v35  ;;  %v188_v51 = vsub.f32 1.5, %v187_v29  ;;  %v71_v27 = vsel %vm798_vm8, %v705_v52, %v782_v44  ;;  %v163_v29 = vmul.f32 %v631_v8, %v162_v56  ;;  %v531_v35 = vld [vmem:[%s1067_s0 + $0x70] sm:$0xff]  ;;  %v546_v52 = vld [vmem:[%s1067_s0 + $0x198] sm:$0xff] }
  0x1e   :  { %v213_v53 = vmul.f32 0.5, %v212_v42  ;;  %v174_v19 = vmul.f32 %v708_v54, %v173_v46  ;;  %v829_v54 = vsel %vm152_vm1, %v153_v4, %v151_v55  ;;  %vm193_vm15 = vcmp.eq.f32.partialorder %v650_v13, 0.0  ;;  %v530_v4 = vld [vmem:[%s1067_s0 + $0x158] sm:$0xff] }
  0x1f   :  { %v200_v58 = vsub.f32 1.5, %v199_v47  ;;  %v189_v24 = vmul.f32 %v713_v57, %v188_v51  ;;  %vm205_vm0 = vcmp.eq.f32.partialorder %v697_v48, 0.0  ;;  %vm217_vm2 = vcmp.eq.f32.partialorder %v662_v18, inf  ;;  %v529_v57 = vld [vmem:[%s1067_s0 + $0x68] sm:$0xff]  ;;  %v532_v47 = vld [vmem:[%s1067_s0 + $0x160] sm:$0xff] }
  0x20   :  { %v214_v0 = vsub.f32 1.5, %v213_v53  ;;  %v265_v2 = vsub.f32 %v525_v5, %v526_v9  ;;  %v139_v30 = vsel %vm138_vm3, %v626_v7, %v137_v62  ;;  %v258_v33 = vmul.f32 %v257_v26, %v257_v26  ;;  %v538_v7 = vld [vmem:[%s1067_s0 + $0x178] sm:$0xff] }
  0x21   :  { %v201_v11 = vmul.f32 %v732_v10, %v200_v58  ;;  %v582_v10 = vpop.eup %581  ;;  %v274_v34 = vsub.f32 %v527_v21, %v528_v22  ;;  %vm856_vm1 = vcmp.eq.f32.partialorder %v72_v6, 8.507059e+37  ;;  %v861_v42 = vadd.f32 %v722_v63, %v95_v14  ;;  %v534_v6 = vld [vmem:[%s1067_s0 + $0x168] sm:$0xff]  ;;  %v535_v58 = vld [vmem:[%s1067_s0 + $0x80] sm:$0xff] }
  0x22   :  { %v215_v31 = vmul.f32 %v751_v1, %v214_v0  ;;  %v175_v43 = vmul.f32 %v611_v3, %v174_v19  ;;  %vm219_vm3 = vcmp.eq.f32.partialorder %v662_v18, 0.0  ;;  %v223_v1 = vmul.f32 %v582_v10, %v768_v32  ;;  %v537_v22 = vld [vmem:[%s1067_s0 + $0x88] sm:$0xff] }
  0x23   :  { %v266_v46 = vmul.f32 %v265_v2, %v265_v2  ;;  %v190_v51 = vmul.f32 %v650_v13, %v189_v24  ;;  %v202_v53 = vmul.f32 %v697_v48, %v201_v11  ;;  %v275_v55 = vmul.f32 %v274_v34, %v274_v34 }
  0x24   :  { %v283_v56 = vsub.f32 %v529_v57, %v530_v4  ;;  %v142_v60 = vsel %vm140_vm4, %v141_v25, %v139_v30  ;;  %v165_v62 = vsel %vm164_vm5, %v631_v8, %v163_v29  ;;  %v224_v0 = vmul.f32 %v582_v10, %v223_v1  ;;  %v539_v30 = vld [vmem:[%s1067_s0 + $0x90] sm:$0xff]  ;;  %v542_v8 = vld [vmem:[%s1067_s0 + $0x188] sm:$0xff] }
  0x25   :  { %v267_v5 = vadd.f32 %v266_v46, %v258_v33  ;;  %v216_v9 = vmul.f32 %v662_v18, %v215_v31  ;;  %v292_v19 = vsub.f32 %v531_v35, %v532_v47  ;;  %v301_v21 = vsub.f32 %v533_v40, %v534_v6  ;;  %v540_v31 = vld [vmem:[%s1067_s0 + $0x180] sm:$0xff]  ;;  %v541_v40 = vld [vmem:[%s1067_s0 + $0x98] sm:$0xff] }
  0x26   :  { %v284_v14 = vmul.f32 %v283_v56, %v283_v56  ;;  %vm899_vm4 = vcmp.eq.f32.partialorder %v101_v12, 8.507059e+37  ;;  %v177_v24 = vsel %vm176_vm7, %v611_v3, %v175_v43  ;;  %v225_v11 = vmul.f32 0.5, %v224_v0 }
  0x27   :  { %v276_v26 = vadd.f32 %v275_v55, %v267_v5  ;;  %v310_v29 = vsub.f32 %v535_v58, %v536_v59  ;;  %v192_v2 = vsel %vm191_vm9, %v650_v13, %v190_v51  ;;  %v204_v57 = vsel %vm203_vm12, %v697_v48, %v202_v53  ;;  %v544_v58 = vld [vmem:[%s1067_s0 + $0x190] sm:$0xff] }
  0x28   :  { %v220_v12 = vand.u32 2147483648, %v662_v18  ;;  %v293_v4 = vmul.f32 %v292_v19, %v292_v19  ;;  %v226_v33 = vsub.f32 1.5, %v225_v11  ;;  %v302_v35 = vmul.f32 %v301_v21, %v301_v21  ;;  %v550_v11 = vld [vmem:[%s1067_s0 + $0x1a8] sm:$0xff] }
  0x29   :  { %v285_v34 = vadd.f32 %v284_v14, %v276_v26  ;;  %v319_v43 = vsub.f32 %v537_v22, %v538_v7  ;;  %v168_v1 = vsel %vm166_vm10, %v167_v39, %v165_v62  ;;  %v180_v46 = vsel %vm178_vm11, %v179_v50, %v177_v24  ;;  %v549_v24 = vld [vmem:[%s1067_s0 + $0xb8] sm:$0xff] }
  0x2a   :  { %v218_v47 = vsel %vm217_vm2, %v662_v18, %v216_v9  ;;  %vm229_vm5 = vcmp.eq.f32.partialorder %v768_v32, inf  ;;  %v227_v39 = vmul.f32 %v582_v10, %v226_v33  ;;  %v311_v6 = vmul.f32 %v310_v29, %v310_v29  ;;  %v543_v10 = vld [vmem:[%s1067_s0 + $0xa0] sm:$0xff] }
  0x2b   :  { %v294_v50 = vadd.f32 %v293_v4, %v285_v34  ;;  %v328_v51 = vsub.f32 %v539_v30, %v540_v31  ;;  %v195_v53 = vsel %vm193_vm15, %v194_v49, %v192_v2  ;;  %v207_v55 = vsel %vm205_vm0, %v206_v20, %v204_v57  ;;  %v548_v9 = vld [vmem:[%s1067_s0 + $0x1a0] sm:$0xff]  ;;  %v552_v4 = vld [vmem:[%s1067_s0 + $0x1b0] sm:$0xff] }
  0x2c   :  { %vm231_vm7 = vcmp.eq.f32.partialorder %v768_v32, 0.0  ;;  %v232_v56 = vand.u32 2147483648, %v768_v32  ;;  %v228_v13 = vmul.f32 %v768_v32, %v227_v39  ;;  %v320_v59 = vmul.f32 %v319_v43, %v319_v43  ;;  %v508_v34 = vld [vmem:[%s1067_s0 + $0x110] sm:$0xff]  ;;  %v554_v43 = vld [vmem:[%s1067_s0 + $0x1b8] sm:$0xff] }
  0x2d   :  { %v303_v49 = vadd.f32 %v302_v35, %v294_v50  ;;  %v337_v62 = vsub.f32 %v541_v40, %v542_v8  ;;  %v76_v48 = vsel %vm856_vm1, %v759_v28, %v71_v27  ;;  %v100_v20 = vsel %vm941_vm6, %v722_v63, %v861_v42  ;;  %v547_v42 = vld [vmem:[%s1067_s0 + $0xb0] sm:$0xff]  ;;  %v553_v35 = vld [vmem:[%s1067_s0 + $0xc8] sm:$0xff] }
  0x2e   :  { %v104_v0 = vor.u32 1.1754944e-38, %v103_v37  ;;  %v221_v5 = vsel %vm219_vm3, %v220_v12, %v218_v47  ;;  %v230_v28 = vsel %vm229_vm5, %v768_v32, %v228_v13  ;;  %v329_v63 = vmul.f32 %v328_v51, %v328_v51  ;;  %v555_v51 = vld [vmem:[%s1067_s0 + $0xd0] sm:$0xff] }
  0x2f   :  { %v312_v44 = vadd.f32 %v311_v6, %v303_v49  ;;  %v346_v27 = vsub.f32 %v543_v10, %v544_v58  ;;  %v155_v45 = vsub.f32 %v142_v60, %v829_v54  ;;  %v181_v37 = vsub.f32 %v168_v1, %v180_v46  ;;  %v520_v1 = vld [vmem:[%s1067_s0 + $0x20] sm:$0xff]  ;;  %v522_v46 = vld [vmem:[%s1067_s0 + $0x138] sm:$0xff]  ;;  %v558_v49 = vld [vmem:[%s1067_s0 + $0x1c8] sm:$0xff] }
  0x30   :  { %v208_v18 = vsub.f32 %v195_v53, %v207_v55  ;;  %v233_v38 = vsel %vm231_vm7, %v232_v56, %v230_v28  ;;  %v338_v21 = vmul.f32 %v337_v62, %v337_v62  ;;  %v355_v22 = vsub.f32 %v545_v61, %v546_v52  ;;  %v556_v53 = vld [vmem:[%s1067_s0 + $0x1c0] sm:$0xff]  ;;  %v560_v61 = vld [vmem:[%s1067_s0 + $0x1d0] sm:$0xff] }
  0x31   :  { %v234_v14 = vsub.f32 %v221_v5, %v233_v38  ;;  %v321_v19 = vadd.f32 %v320_v59, %v312_v44  ;;  %v105_v54 = vsel %vm899_vm4, %v104_v0, %v100_v20  ;;  %v123_v60 = vmul.f32 %v739_v16, %v739_v16  ;;  %v559_v5 = vld [vmem:[%s1067_s0 + $0xe0] sm:$0xff] }
  0x32   :  { %v126_v32 = vmul.f32 %v742_v17, %v742_v17  ;;  %v128_v7 = vmul.f32 %v748_v23, %v748_v23  ;;  %v77_v25 = vmul.f32 %v76_v48, %v678_v36  ;;  %v347_v29 = vmul.f32 %v346_v27, %v346_v27  ;;  %v551_v23 = vld [vmem:[%s1067_s0 + $0xc0] sm:$0xff] }
  0x33   :  { %v330_v26 = vadd.f32 %v329_v63, %v321_v19  ;;  %v364_v2 = vsub.f32 %v547_v42, %v548_v9  ;;  %v156_v16 = vmul.f32 %v155_v45, %v155_v45  ;;  %v182_v57 = vmul.f32 %v181_v37, %v181_v37  ;;  %v561_v45 = vld [vmem:[%s1067_s0 + $0xe8] sm:$0xff]  ;;  %v562_v37 = vld [vmem:[%s1067_s0 + $0x1d8] sm:$0xff] }
  0x34   :  { %v209_v12 = vmul.f32 %v208_v18, %v208_v18  ;;  %v235_v17 = vmul.f32 %v234_v14, %v234_v14  ;;  %v106_v30 = vmul.f32 %v105_v54, %v684_v41  ;;  %v356_v33 = vmul.f32 %v355_v22, %v355_v22  ;;  %v521_v41 = vld [vmem:[%s1067_s0 + $0x48] sm:$0xff] }
  0x35   :  { %v339_v31 = vadd.f32 %v338_v21, %v330_v26  ;;  %v373_v36 = vsub.f32 %v549_v24, %v550_v11  ;;  %v365_v40 = vmul.f32 %v364_v2, %v364_v2  ;;  %v382_v8 = vsub.f32 %v551_v23, %v552_v4 }
  0x36   :  { %v124_v3 = vadd.f32 %v123_v60, %v735_v15  ;;  %v129_v39 = vadd.f32 %v128_v7, %v126_v32  ;;  %v183_v50 = vadd.f32 %v182_v57, %v156_v16  ;;  %v236_v6 = vadd.f32 %v235_v17, %v209_v12  ;;  %v557_v15 = vld [vmem:[%s1067_s0 + $0xd8] sm:$0xff] }
  0x37   :  { %v348_v47 = vadd.f32 %v347_v29, %v339_v31  ;;  %vm107_vm8 = vcmp.ge.f32.partialorder %v77_v25, %v106_v30  ;;  %v374_v56 = vmul.f32 %v373_v36, %v373_v36  ;;  %v391_v10 = vsub.f32 %v553_v35, %v554_v43 }
  0x38   :  { %v240_v58 = vsub.f32 %v520_v1, %v508_v34  ;;  %v248_v13 = vsub.f32 %v521_v41, %v522_v46  ;;  %v383_v62 = vmul.f32 %v382_v8, %v382_v8  ;;  %v400_v48 = vsub.f32 %v555_v51, %v556_v53 }
  0x39   :  { %v357_v55 = vadd.f32 %v356_v33, %v348_v47  ;;  %v130_v20 = vsel %vm107_vm8, %v124_v3, %v129_v39  ;;  %v237_v0 = vsel %vm107_vm8, %v183_v50, %v236_v6  ;;  %v392_v28 = vmul.f32 %v391_v10, %v391_v10 }
  0x3a   :  { %v409_v44 = vsub.f32 %v557_v15, %v558_v49  ;;  %v241_v63 = vmul.f32 %v240_v58, %v240_v58  ;;  %v249_v27 = vmul.f32 %v248_v13, %v248_v13  ;;  %v401_v38 = vmul.f32 %v400_v48, %v400_v48 }
  0x3b   :  { %v366_v59 = vadd.f32 %v365_v40, %v357_v55  ;;  %v418_v42 = vsub.f32 %v559_v5, %v560_v61  ;;  %v430_v9 = vadd.f32 %v237_v0, %v130_v20  ;;  %v427_v21 = vsub.f32 %v561_v45, %v562_v37 }
  0x3c   :  { %v410_v19 = vmul.f32 %v409_v44, %v409_v44  ;;  %v250_v22 = vsel %vm107_vm8, %v241_v63, %v249_v27  ;;  %vm434_vm9 = vcmp.eq.f32.partialorder %v508_v34, 0.0  ;;  %vm437_vm10 = vcmp.gt.f32.partialorder %v508_v34, 0.0 }
  0x3d   :  { %v375_v52 = vadd.f32 %v374_v56, %v366_v59  ;;  %v419_v60 = vmul.f32 %v418_v42, %v418_v42  ;;  %v431_v32 = vmul.f32 5.0, %v430_v9  ;;  %v428_v24 = vmul.f32 %v427_v21, %v427_v21 }
  0x3e   :  { %v435_v11 = vmul.f32 0.5, %v250_v22 }
  0x3f   :  { %v384_v18 = vadd.f32 %v383_v62, %v375_v52  ;;  %v432_v29 = vadd.f32 %v431_v32, %v250_v22 }
  0x40   :  { %v436_v16 = vsel %vm434_vm9, %v435_v11, 0.0 }
  0x41   :  { %v393_v14 = vadd.f32 %v392_v28, %v384_v18 }
  0x43   :  { %v402_v54 = vadd.f32 %v401_v38, %v393_v14 }
  0x45   :  { %v411_v7 = vadd.f32 %v410_v19, %v402_v54 }
  0x47   :  { %v420_v26 = vadd.f32 %v419_v60, %v411_v7 }
  0x49   :  { %v429_v2 = vadd.f32 %v428_v24, %v420_v26 }
  0x4b   :  { %v433_v57 = vadd.f32 %v432_v29, %v429_v2 }
  0x4d   :  { %v438_v12 = vsel %vm437_vm10, %v433_v57, %v436_v16 }
  0x4e   :  { %440 = vst [vmem:[%s1068_s1] sm:$0xff] %v438_v12 }

</bundles_post_ra>
